<compile_context>
chip_gen: v7x
topology: tpu7x:2x2x1
jax: 0.10.0
libtpu: 0.0.40
codegen_flags: <defaults>
</compile_context>

<pallas_src>
import functools

import jax
import jax.numpy as jnp
import numpy as np
from jax.experimental import pallas as pl
from jax.experimental.pallas import tpu as pltpu


def _gnn_fused_kernel(a_in_ref, a_out_ref, h_ref, bias_ref,
                      wf_in_ref, wf_out_ref, w_hh_ref, b_hh_n_ref,
                      out_ref, *, step):
    """Runs `step` gated-graph-cell updates for one batch tile, all in VMEM."""
    Bt, N, H = h_ref.shape
    G = 3 * H
    M = Bt * N

    # Hoist weights / constant bias out of the step loop (resident across steps).
    a_in = a_in_ref[...]                        # (Bt, N, N)  compute dtype
    a_out = a_out_ref[...]                      # (Bt, N, N)
    wf_in = wf_in_ref[...]                      # (H, 3H)
    wf_out = wf_out_ref[...]                    # (H, 3H)
    w_hh = w_hh_ref[...]                        # (H, 3H)
    bias = bias_ref[...].reshape(M, G)          # (M, 3H) f32, constant over steps
    b_hh_n = b_hh_n_ref[...]                    # (1, H)  f32 (newgate hidden bias)
    mm_dt = wf_in.dtype
    a_dt = a_in.dtype

    def cell(h):                                # h: (M, H) f32
        hm = h.astype(mm_dt)
        # Fused edge+input projections: one K=H matmul each, output width 3H.
        hi = jnp.dot(hm, wf_in, preferred_element_type=jnp.float32)    # (M, 3H)
        ho = jnp.dot(hm, wf_out, preferred_element_type=jnp.float32)   # (M, 3H)
        gh = jnp.dot(hm, w_hh, preferred_element_type=jnp.float32)     # (M, 3H)
        gi = (jnp.einsum("bnm,bmk->bnk", a_in,
                         hi.astype(a_dt).reshape(Bt, N, G),
                         preferred_element_type=jnp.float32)
              + jnp.einsum("bnm,bmk->bnk", a_out,
                           ho.astype(a_dt).reshape(Bt, N, G),
                           preferred_element_type=jnp.float32)
              ).reshape(M, G) + bias
        # GRU gates (f32 elementwise; sigmoid/tanh go to the EUP).
        ri = jax.nn.sigmoid(gi[:, :2 * H] + gh[:, :2 * H])   # [reset | update]
        r = ri[:, :H]
        z = ri[:, H:]
        n = jnp.tanh(gi[:, 2 * H:] + r * (gh[:, 2 * H:] + b_hh_n))
        return n + z * (h - n)

    h = h_ref[...].reshape(M, H).astype(jnp.float32)
    if step <= 2:                    # static unroll for the usual SR-GNN step counts
        for _ in range(step):
            h = cell(h)
    else:
        h = jax.lax.fori_loop(0, step, lambda _, hh: cell(hh), h)

    out_ref[...] = h.reshape(Bt, N, H).astype(out_ref.dtype)


def _pick_block_batch(B, N, H, a_itemsize, budget_bytes=8 << 20):
    """Largest batch tile that divides B, fits a conservative VMEM budget, and
    (when possible) keeps >=2 grid steps so v7x's two TensorCores both work."""
    per_b = 2 * (2 * N * N * a_itemsize + 5 * N * H * 4)   # double-buffered blocks
    cap = max(1, budget_bytes // max(per_b, 1))
    divisors = [d for d in range(1, B + 1) if B % d == 0 and d <= cap]
    if not divisors:
        return 1
    multi = [d for d in divisors if B // d >= 2]
    return max(multi) if multi else max(divisors)


@functools.partial(jax.jit, static_argnames=("step", "compute_dtype"))
def gnn_forward(A, hidden, params, step=1, compute_dtype=jnp.float32):
    """SR-GNN GNN.forward: `step` gated-graph updates of hidden given A=[A_in|A_out]."""
    B, N, H = hidden.shape
    G = 3 * H
    cdt = jnp.dtype(compute_dtype)

    # ---- wrapper-side weight fusion (removes the concat + 4 small matmuls) ----
    w_top = params["w_ih_T"][:H]                # (H, 3H): acts on input_in
    w_bot = params["w_ih_T"][H:]                # (H, 3H): acts on input_out
    wf_in = params["w_edge_in_T"] @ w_top       # (H, 3H)
    wf_out = params["w_edge_out_T"] @ w_bot     # (H, 3H)
    be_in = params["b_edge_in"] @ w_top         # (1, 3H) -> scaled by A_in row sums
    be_out = params["b_edge_out"] @ w_bot       # (1, 3H) -> scaled by A_out row sums
    b_hh = params["b_hh"]
    b_fixed = (params["b_iah"] @ w_top + params["b_oah"] @ w_bot + params["b_ih"]
               + jnp.concatenate([b_hh[:, :2 * H],
                                  jnp.zeros((1, H), b_hh.dtype)], axis=1))  # (1, 3H)
    b_hh_n = b_hh[:, 2 * H:]                    # (1, H) stays with reset-gated term

    A_in = A[:, :, :N]
    A_out = A[:, :, N:2 * N]
    rs_in = jnp.sum(A_in, axis=-1, keepdims=True)       # (B, N, 1)
    rs_out = jnp.sum(A_out, axis=-1, keepdims=True)
    bias_all = (rs_in * be_in + rs_out * be_out + b_fixed).astype(jnp.float32)

    # Matmul operands in compute dtype (bf16 on v6e/v7x halves A traffic).
    A_in_c = A_in.astype(cdt)
    A_out_c = A_out.astype(cdt)
    wf_in_c = wf_in.astype(cdt)
    wf_out_c = wf_out.astype(cdt)
    w_hh_c = params["w_hh_T"].astype(cdt)

    bt = _pick_block_batch(B, N, H, cdt.itemsize)
    grid = (B // bt,)
    tile3 = lambda shape: pl.BlockSpec(shape, lambda b: (b, 0, 0))
    shared = lambda shape: pl.BlockSpec(shape, lambda b: (0, 0))

    return pl.pallas_call(
        functools.partial(_gnn_fused_kernel, step=step),
        out_shape=jax.ShapeDtypeStruct((B, N, H), hidden.dtype),
        grid_spec=pltpu.PrefetchScalarGridSpec(
            num_scalar_prefetch=0,
            grid=grid,
            in_specs=[
                tile3((bt, N, N)),      # A_in
                tile3((bt, N, N)),      # A_out
                tile3((bt, N, H)),      # hidden
                tile3((bt, N, G)),      # fused per-node bias
                shared((H, G)),         # Wf_in
                shared((H, G)),         # Wf_out
                shared((H, G)),         # w_hh^T
                shared((1, H)),         # b_hh (newgate third)
            ],
            out_specs=tile3((bt, N, H)),
        ),
        compiler_params=pltpu.CompilerParams(
            dimension_semantics=("parallel",)),
    )(A_in_c, A_out_c, hidden, bias_all, wf_in_c, wf_out_c, w_hh_c,
      b_hh_n.astype(jnp.float32))


def init_gnn_params(key, hidden_size):
    """Deterministic uniform(-stdv, stdv) init, matching SR-GNN's reset_parameters."""
    H = hidden_size
    stdv = 1.0 / jnp.sqrt(jnp.float32(H))
    keys = jax.random.split(key, 12)
    u = lambda k, shape: jax.random.uniform(
        k, shape, dtype=jnp.float32, minval=-stdv, maxval=stdv)

    # Stored pre-transposed (in, out) so kernels compute x @ W.
    return {
        "w_ih_T":       u(keys[0], (2 * H, 3 * H)),   # torch w_ih: (3H, 2H)
        "w_hh_T":       u(keys[1], (H, 3 * H)),       # torch w_hh: (3H, H)
        "b_ih":         u(keys[2], (1, 3 * H)),
        "b_hh":         u(keys[3], (1, 3 * H)),
        "b_iah":        u(keys[4], (1, H)),
        "b_oah":        u(keys[5], (1, H)),
        "w_edge_in_T":  u(keys[6], (H, H)),
        "b_edge_in":    u(keys[7], (1, H)),
        "w_edge_out_T": u(keys[8], (H, H)),
        "b_edge_out":   u(keys[9], (1, H)),
        # linear_edge_f exists in __init__ but is unused in forward; kept for parity.
        "w_edge_f_T":   u(keys[10], (H, H)),
        "b_edge_f":     u(keys[11], (1, H)),
    }


def gnn_reference(A, hidden, params, step=1):
    """Pure-JAX mirror of the PyTorch GNN.forward (for a correctness sanity check)."""
    B, N, H = hidden.shape
    A_in = A[:, :, :N]
    A_out = A[:, :, N:2 * N]
    for _ in range(step):
        edge_in = hidden @ params["w_edge_in_T"] + params["b_edge_in"]
        edge_out = hidden @ params["w_edge_out_T"] + params["b_edge_out"]
        input_in = jnp.einsum("bnm,bmh->bnh", A_in, edge_in) + params["b_iah"]
        input_out = jnp.einsum("bnm,bmh->bnh", A_out, edge_out) + params["b_oah"]
        inputs = jnp.concatenate([input_in, input_out], axis=-1)
        gi = inputs @ params["w_ih_T"] + params["b_ih"]
        gh = hidden @ params["w_hh_T"] + params["b_hh"]
        i_r, i_i, i_n = gi[..., :H], gi[..., H:2 * H], gi[..., 2 * H:]
        h_r, h_i, h_n = gh[..., :H], gh[..., H:2 * H], gh[..., 2 * H:]
        r = jax.nn.sigmoid(i_r + h_r)
        z = jax.nn.sigmoid(i_i + h_i)
        n = jnp.tanh(i_n + r * h_n)
        hidden = n + z * (hidden - n)
    return hidden


if __name__ == "__main__":
    B, N, H = 2, 8, 32   # batch, num graph nodes, hidden_size
    STEP = 1

    key = jax.random.PRNGKey(0)
    k_a, k_h, k_p = jax.random.split(key, 3)

    A = jax.random.uniform(k_a, (B, N, 2 * N), dtype=jnp.float32)   # [B, N, 2N]
    hidden = jax.random.normal(k_h, (B, N, H), dtype=jnp.float32)   # [B, N, H]
    params = init_gnn_params(k_p, H)

    out = gnn_forward(A, hidden, params, step=STEP)
    out = jax.block_until_ready(out)
    assert out.shape == (B, N, H)

    ref = gnn_reference(A, hidden, params, step=STEP)
    np.testing.assert_allclose(np.asarray(out), np.asarray(ref), rtol=2e-2, atol=2e-2)
    print("KERNEL_OK")
</pallas_src>

<mosaic_0001>
module attributes {stable_mosaic.version = 11 : i64} {
  func.func @_gnn_fused_kernel(%arg0: i32, %arg1: memref<1x8x8xf32, #tpu.memory_space<vmem>>, %arg2: memref<1x8x8xf32, #tpu.memory_space<vmem>>, %arg3: memref<1x8x32xf32, #tpu.memory_space<vmem>>, %arg4: memref<1x8x96xf32, #tpu.memory_space<vmem>>, %arg5: memref<32x96xf32, #tpu.memory_space<vmem>>, %arg6: memref<32x96xf32, #tpu.memory_space<vmem>>, %arg7: memref<32x96xf32, #tpu.memory_space<vmem>>, %arg8: memref<1x32xf32, #tpu.memory_space<vmem>>, %arg9: memref<1x8x32xf32, #tpu.memory_space<vmem>>) attributes {dimension_semantics = [#tpu.dimension_semantics<parallel>], iteration_bounds = array<i64: 2>, scalar_prefetch = 0 : i64, scratch_operands = 0 : i64, tpu.core_type = #tpu.core_type<tc>, window_params = [{transform_indices = @transform_0, window_bounds = array<i64: 1, 8, 8>}, {transform_indices = @transform_1, window_bounds = array<i64: 1, 8, 8>}, {transform_indices = @transform_2, window_bounds = array<i64: 1, 8, 32>}, {transform_indices = @transform_3, window_bounds = array<i64: 1, 8, 96>}, {pipeline_mode = #tpu.pipeline_mode<synchronous>, transform_indices = @transform_4, window_bounds = array<i64: 32, 96>}, {pipeline_mode = #tpu.pipeline_mode<synchronous>, transform_indices = @transform_5, window_bounds = array<i64: 32, 96>}, {pipeline_mode = #tpu.pipeline_mode<synchronous>, transform_indices = @transform_6, window_bounds = array<i64: 32, 96>}, {pipeline_mode = #tpu.pipeline_mode<synchronous>, transform_indices = @transform_7, window_bounds = array<i64: 1, 32>}, {transform_indices = @transform_8, window_bounds = array<i64: 1, 8, 32>}]} {
    %c0 = arith.constant 0 : index
    %c0_0 = arith.constant 0 : index
    %c0_1 = arith.constant 0 : index
    %0 = vector.load %arg1[%c0, %c0_0, %c0_1] : memref<1x8x8xf32, #tpu.memory_space<vmem>>, vector<1x8x8xf32>
    %c0_2 = arith.constant 0 : index
    %c0_3 = arith.constant 0 : index
    %c0_4 = arith.constant 0 : index
    %1 = vector.load %arg2[%c0_2, %c0_3, %c0_4] : memref<1x8x8xf32, #tpu.memory_space<vmem>>, vector<1x8x8xf32>
    %c0_5 = arith.constant 0 : index
    %c0_6 = arith.constant 0 : index
    %2 = vector.load %arg5[%c0_5, %c0_6] : memref<32x96xf32, #tpu.memory_space<vmem>>, vector<32x96xf32>
    %c0_7 = arith.constant 0 : index
    %c0_8 = arith.constant 0 : index
    %3 = vector.load %arg6[%c0_7, %c0_8] : memref<32x96xf32, #tpu.memory_space<vmem>>, vector<32x96xf32>
    %c0_9 = arith.constant 0 : index
    %c0_10 = arith.constant 0 : index
    %4 = vector.load %arg7[%c0_9, %c0_10] : memref<32x96xf32, #tpu.memory_space<vmem>>, vector<32x96xf32>
    %c0_11 = arith.constant 0 : index
    %c0_12 = arith.constant 0 : index
    %c0_13 = arith.constant 0 : index
    %5 = vector.load %arg4[%c0_11, %c0_12, %c0_13] : memref<1x8x96xf32, #tpu.memory_space<vmem>>, vector<1x8x96xf32>
    %6 = vector.shape_cast %5 : vector<1x8x96xf32> to vector<8x96xf32>
    %c0_14 = arith.constant 0 : index
    %c0_15 = arith.constant 0 : index
    %7 = vector.load %arg8[%c0_14, %c0_15] : memref<1x32xf32, #tpu.memory_space<vmem>>, vector<1x32xf32>
    %c0_16 = arith.constant 0 : index
    %c0_17 = arith.constant 0 : index
    %c0_18 = arith.constant 0 : index
    %8 = vector.load %arg3[%c0_16, %c0_17, %c0_18] : memref<1x8x32xf32, #tpu.memory_space<vmem>>, vector<1x8x32xf32>
    %9 = vector.shape_cast %8 : vector<1x8x32xf32> to vector<8x32xf32>
    %cst = arith.constant dense<0.000000e+00> : vector<8x96xf32>
    %10 = tpu.matmul %9, %2, %cst {dimension_numbers = #tpu.dot_dimension_numbers<[1], [0], [0], [1], [0, 0, 1, 1], [], []>} : vector<8x32xf32>, vector<32x96xf32>, vector<8x96xf32> -> vector<8x96xf32>
    %cst_19 = arith.constant dense<0.000000e+00> : vector<8x96xf32>
    %11 = tpu.matmul %9, %3, %cst_19 {dimension_numbers = #tpu.dot_dimension_numbers<[1], [0], [0], [1], [0, 0, 1, 1], [], []>} : vector<8x32xf32>, vector<32x96xf32>, vector<8x96xf32> -> vector<8x96xf32>
    %cst_20 = arith.constant dense<0.000000e+00> : vector<8x96xf32>
    %12 = tpu.matmul %9, %4, %cst_20 {dimension_numbers = #tpu.dot_dimension_numbers<[1], [0], [0], [1], [0, 0, 1, 1], [], []>} : vector<8x32xf32>, vector<32x96xf32>, vector<8x96xf32> -> vector<8x96xf32>
    %13 = vector.shape_cast %10 : vector<8x96xf32> to vector<1x8x96xf32>
    "tpu.trace_start"() <{level = 10 : i32, message = "bnm,bmk->bnk"}> : () -> ()
    %cst_21 = arith.constant dense<0.000000e+00> : vector<1x8x96xf32>
    %14 = tpu.matmul %0, %13, %cst_21 {dimension_numbers = #tpu.dot_dimension_numbers<[2], [1], [1], [2], [0, 0, 0, 1, 1, 2], [0], [0]>} : vector<1x8x8xf32>, vector<1x8x96xf32>, vector<1x8x96xf32> -> vector<1x8x96xf32>
    "tpu.trace_stop"() : () -> ()
    %15 = vector.shape_cast %11 : vector<8x96xf32> to vector<1x8x96xf32>
    "tpu.trace_start"() <{level = 10 : i32, message = "bnm,bmk->bnk"}> : () -> ()
    %cst_22 = arith.constant dense<0.000000e+00> : vector<1x8x96xf32>
    %16 = tpu.matmul %1, %15, %cst_22 {dimension_numbers = #tpu.dot_dimension_numbers<[2], [1], [1], [2], [0, 0, 0, 1, 1, 2], [0], [0]>} : vector<1x8x8xf32>, vector<1x8x96xf32>, vector<1x8x96xf32> -> vector<1x8x96xf32>
    "tpu.trace_stop"() : () -> ()
    %17 = arith.addf %14, %16 : vector<1x8x96xf32>
    %18 = vector.shape_cast %17 : vector<1x8x96xf32> to vector<8x96xf32>
    %19 = arith.addf %18, %6 : vector<8x96xf32>
    %20 = vector.extract_strided_slice %19 {offsets = [0, 0], sizes = [8, 64], strides = [1, 1]} : vector<8x96xf32> to vector<8x64xf32>
    %21 = vector.extract_strided_slice %12 {offsets = [0, 0], sizes = [8, 64], strides = [1, 1]} : vector<8x96xf32> to vector<8x64xf32>
    %22 = arith.addf %20, %21 : vector<8x64xf32>
    %23 = arith.negf %22 : vector<8x64xf32>
    %24 = math.exp %23 : vector<8x64xf32>
    %cst_23 = arith.constant 1.000000e+00 : f32
    %25 = vector.broadcast %cst_23 : f32 to vector<8x64xf32>
    %26 = arith.addf %25, %24 : vector<8x64xf32>
    %27 = arith.divf %25, %26 : vector<8x64xf32>
    %28 = vector.extract_strided_slice %27 {offsets = [0, 0], sizes = [8, 32], strides = [1, 1]} : vector<8x64xf32> to vector<8x32xf32>
    %29 = vector.extract_strided_slice %27 {offsets = [0, 32], sizes = [8, 32], strides = [1, 1]} : vector<8x64xf32> to vector<8x32xf32>
    %30 = vector.extract_strided_slice %19 {offsets = [0, 64], sizes = [8, 32], strides = [1, 1]} : vector<8x96xf32> to vector<8x32xf32>
    %31 = vector.extract_strided_slice %12 {offsets = [0, 64], sizes = [8, 32], strides = [1, 1]} : vector<8x96xf32> to vector<8x32xf32>
    %32 = vector.broadcast %7 : vector<1x32xf32> to vector<8x32xf32>
    %33 = arith.addf %31, %32 : vector<8x32xf32>
    %34 = arith.mulf %28, %33 : vector<8x32xf32>
    %35 = arith.addf %30, %34 : vector<8x32xf32>
    %36 = math.tanh %35 : vector<8x32xf32>
    %37 = arith.subf %9, %36 : vector<8x32xf32>
    %38 = arith.mulf %29, %37 : vector<8x32xf32>
    %39 = arith.addf %36, %38 : vector<8x32xf32>
    %40 = vector.shape_cast %39 : vector<8x32xf32> to vector<1x8x32xf32>
    %c0_24 = arith.constant 0 : index
    %c0_25 = arith.constant 0 : index
    %c0_26 = arith.constant 0 : index
    %41 = vector.load %arg9[%c0_24, %c0_25, %c0_26] : memref<1x8x32xf32, #tpu.memory_space<vmem>>, vector<1x8x32xf32>
    tpu.vector_store %arg9[%c0_24, %c0_25, %c0_26], %40 {strides = array<i32>} : memref<1x8x32xf32, #tpu.memory_space<vmem>>, vector<1x8x32xf32>,
    return
  }
  func.func @transform_0(%arg0: i32) -> (i32, i32, i32) {
    %c0_i32 = arith.constant 0 : i32
    %c0_i32_0 = arith.constant 0 : i32
    %c0_i32_1 = arith.constant 0 : i32
    return %arg0, %c0_i32, %c0_i32_0 : i32, i32, i32
  }
  func.func @transform_1(%arg0: i32) -> (i32, i32, i32) {
    %c0_i32 = arith.constant 0 : i32
    %c0_i32_0 = arith.constant 0 : i32
    %c0_i32_1 = arith.constant 0 : i32
    return %arg0, %c0_i32, %c0_i32_0 : i32, i32, i32
  }
  func.func @transform_2(%arg0: i32) -> (i32, i32, i32) {
    %c0_i32 = arith.constant 0 : i32
    %c0_i32_0 = arith.constant 0 : i32
    %c0_i32_1 = arith.constant 0 : i32
    return %arg0, %c0_i32, %c0_i32_0 : i32, i32, i32
  }
  func.func @transform_3(%arg0: i32) -> (i32, i32, i32) {
    %c0_i32 = arith.constant 0 : i32
    %c0_i32_0 = arith.constant 0 : i32
    %c0_i32_1 = arith.constant 0 : i32
    return %arg0, %c0_i32, %c0_i32_0 : i32, i32, i32
  }
  func.func @transform_4(%arg0: i32) -> (i32, i32) {
    %c0_i32 = arith.constant 0 : i32
    %c0_i32_0 = arith.constant 0 : i32
    %c0_i32_1 = arith.constant 0 : i32
    return %c0_i32, %c0_i32_0 : i32, i32
  }
  func.func @transform_5(%arg0: i32) -> (i32, i32) {
    %c0_i32 = arith.constant 0 : i32
    %c0_i32_0 = arith.constant 0 : i32
    %c0_i32_1 = arith.constant 0 : i32
    return %c0_i32, %c0_i32_0 : i32, i32
  }
  func.func @transform_6(%arg0: i32) -> (i32, i32) {
    %c0_i32 = arith.constant 0 : i32
    %c0_i32_0 = arith.constant 0 : i32
    %c0_i32_1 = arith.constant 0 : i32
    return %c0_i32, %c0_i32_0 : i32, i32
  }
  func.func @transform_7(%arg0: i32) -> (i32, i32) {
    %c0_i32 = arith.constant 0 : i32
    %c0_i32_0 = arith.constant 0 : i32
    %c0_i32_1 = arith.constant 0 : i32
    return %c0_i32, %c0_i32_0 : i32, i32
  }
  func.func @transform_8(%arg0: i32) -> (i32, i32, i32) {
    %c0_i32 = arith.constant 0 : i32
    %c0_i32_0 = arith.constant 0 : i32
    %c0_i32_1 = arith.constant 0 : i32
    return %arg0, %c0_i32, %c0_i32_0 : i32, i32, i32
  }
}

</mosaic_0001>

<bundles_post_ra>
// kernel: gnn_forward.1
= control target key start
LH: loop header
LB: loop body
LE: loop exit
PB: predicated region body
PF: predicated region fallthrough
CT: control target
= control target key end

     0   :  { %13 = vsyncpa [#allocation3], 0  ;;  %s1326_s0 = inlined_call_operand.vmem [shape: f32[2,8,8], index: 0, kind: input, shape index: {}]   ;;  %s1327_s1 = inlined_call_operand.vmem [shape: f32[2,8,8], index: 1, kind: input, shape index: {}]   ;;  %s1328_s2 = inlined_call_operand.vmem [shape: f32[2,8,32], index: 2, kind: input, shape index: {}]   ;;  %s1329_s3 = inlined_call_operand.vmem [shape: f32[2,8,96], index: 3, kind: input, shape index: {}]   ;;  %s1330_s4 = inlined_call_operand.vmem [shape: f32[32,96], index: 4, kind: input, shape index: {}]   ;;  %s1331_s5 = inlined_call_operand.vmem [shape: f32[32,96], index: 5, kind: input, shape index: {}]   ;;  %s1332_s6 = inlined_call_operand.vmem [shape: f32[32,96], index: 6, kind: input, shape index: {}]   ;;  %s1333_s7 = inlined_call_operand.vmem [shape: f32[1,32], index: 7, kind: input, shape index: {}]   ;;  %s1334_s8 = inlined_call_operand.hbm [shape: f32[2,8,32], index: 8, kind: output, shape index: {}]  }
   0x1   :  { %15 = vsyncpa [#allocation3 + $0x1], 0  ;;  %s1152_s27 = smov 0   ;;  %s1154_s28 = smov 0  }
   0x2   :  { %s1156_s29 = smov 0   ;;  %s1158_s30 = smov 0  }
   0x3 LB: > { %s1173_s9 = sadd.s32 4294967295, %s1099_s30   ;;  %s887_s10 = sadd.s32 4294967294, %s1099_s30   ;;  %s1099_s30 = sphi %s1158_s30, %s1340_s30   ;;  %s1095_s29 = sphi %s1156_s29, %s1339_s29   ;;  %s1091_s28 = sphi %s1154_s28, %s1338_s28   ;;  %s1087_s27 = sphi %s1152_s27, %s1337_s27  }
   0x4   : > { %s1177_s11 = sadd.s32 1, %s1099_s30   ;;  %s216_s12 = sadd.s32 1, %s1095_s29 }
   0x5   : > { %s213_s13 = ssub.s32 %s1099_s30, %s1177_s11  ;;  %p226_p0 = scmp.ne.s32.totalorder %s1095_s29, %s1091_s28 }
   0x6   : > { %p214_p1 = scmp.eq.s32.totalorder %s213_s13, 0  ;;  %p227_p2 = scmp.eq.s32.totalorder %s1173_s9, 1 }
   0x7   : > { %p232_p3 = scmp.ne.s32.totalorder %s1091_s28, %s1087_s27  ;;  %p233_p4 = scmp.eq.s32.totalorder %s887_s10, 1 }
   0x8   : > { %s1188_s14 = scalar_select %p214_p1, %s1095_s29, %s216_s12  }
   0x9   : > { %p1190_p5 = por %p227_p2, %p226_p0  ;;  %p1194_p6 = por %p233_p4, %p232_p3 }
   0xa   : > { %p890_p7 = scmp.ge.s32.totalorder %s1099_s30, 1  ;;  %p291_p8 = scmp.lt.s32.totalorder %s1099_s30, 3 }
   0xc   : > { %p292_p9 = pnand %p890_p7, %p291_p8 }
   0xd   : > { %v358_v0 = vld [vmem:[%s1331_s5] sm:$0xff] (!%p292_p9)  ;;  %v359_v1 = vld [vmem:[%s1331_s5 + $0x8] sm:$0xff] (!%p292_p9)  ;;  %v1101_v3 = vmov (!%p292_p9), 0.0|0.0   ;;  %v360_v6 = vld [vmem:[%s1331_s5 + $0x10] sm:$0xff] (!%p292_p9)  ;;  %p336_p10 = scmp.lt.s32.totalorder (!%p292_p9), %s1173_s9, 1  ;;  %vm1102_vm0 = vmmov (!%p292_p9), 0  }
   0xe   : > { %295 = sbr.rel (%p292_p9) target bundleno = 1097 (0x449), region = 52  ;;  %v354_v2 = vld [vmem:[%s1330_s4] sm:$0xff] (!%p292_p9)  ;;  %975 = vmatprep.subr.bf16.mxu1 (!%p292_p9), %v1101_v3  ;;  %v976_v4 = vpack.c.bf16 (!%p292_p9), %v359_v1, %v358_v0  ;;  %969 = vmatprep.subr.bf16.mxu0 (!%p292_p9), %v1101_v3  ;;  %v355_v5 = vld [vmem:[%s1330_s4 + $0x8] sm:$0xff] (!%p292_p9)  ;;  %v361_v7 = vld [vmem:[%s1331_s5 + $0x18] sm:$0xff] (!%p292_p9)  ;;  %v1103_v9 = vmov (!%p292_p9), 0.0   ;;  %vm369_vm1 = vcmask (!%p292_p9), 261120  }
   0xf   : > { %v970_v8 = vpack.c.bf16 (!%p292_p9), %v355_v5, %v354_v2  ;;  %945 = vmatprep.mubr.msk.f32.mxu1 (!%p292_p9), %vm1102_vm0, %v1103_v9  ;;  %v356_v10 = vld [vmem:[%s1330_s4 + $0x10] sm:$0xff] (!%p292_p9)  ;;  %v357_v11 = vld [vmem:[%s1330_s4 + $0x18] sm:$0xff] (!%p292_p9)  ;;  %934 = vmatprep.mubr.msk.f32.mxu0 (!%p292_p9), %vm1102_vm0, %v1103_v9  ;;  %v979_v12 = vpack.c.bf16 (!%p292_p9), %v361_v7, %v360_v6  ;;  %v362_v14 = vld [vmem:[%s1332_s6] sm:$0xff] (!%p292_p9)  ;;  %s1104_s23 = smov (!%p292_p9), 64   ;;  %vm583_vm2 = vcmask (!%p292_p9), 64512   ;;  %s904_s24 = sshll.u32 (!%p292_p9), %s1173_s9, 7 }
  0x10   : > { %977 = vmatpush3.bf16.msra.mxu1 (!%p292_p9), %v976_v4  ;;  %v973_v13 = vpack.c.bf16 (!%p292_p9), %v357_v11, %v356_v10  ;;  %v363_v15 = vld [vmem:[%s1332_s6 + $0x8] sm:$0xff] (!%p292_p9)  ;;  %v364_v18 = vld [vmem:[%s1332_s6 + $0x10] sm:$0xff] (!%p292_p9)  ;;  %v365_v19 = vld [vmem:[%s1332_s6 + $0x18] sm:$0xff] (!%p292_p9) }
  0x11   : > { %971 = vmatpush3.bf16.msra.mxu0 (!%p292_p9), %v970_v8  ;;  %978 = vmatprep.subr.bf16.mxu1 (!%p292_p9), %v1101_v3  ;;  %v982_v17 = vpack.c.bf16 (!%p292_p9), %v363_v15, %v362_v14  ;;  %v985_v20 = vpack.c.bf16 (!%p292_p9), %v365_v19, %v364_v18  ;;  %v902_v21 = vld [vmem:[%s1333_s7] ss:$0 sm:$0xff] (!%p292_p9) }
  0x12   : > { %972 = vmatprep.subr.bf16.mxu0 (!%p292_p9), %v1101_v3  ;;  %743 = vrot.lane.b32.xlu0 (!%p292_p9), %v902_v21, %s1104_s23 }
  0x14   : > { %980 = vmatpush3.bf16.msra.mxu1 (!%p292_p9), %v979_v12 }
  0x15   : > { %s337_s20 = scalar_select %p336_p10, %s1173_s9, 1  ;;  %974 = vmatpush3.bf16.msra.mxu0 %v973_v13  ;;  %959 = vmatprep.subr.mxu1 %v1103_v9 }
  0x16   : > { %981 = vmatprep.subr.bf16.mxu0 %v1101_v3  ;;  %s1106_s9 = smov [#allocation2]  }
  0x17   : > { %s1228_s21 = sshll.u32 %s337_s20, 3  ;;  %s333_s20 = sand.u32 1, %s1091_s28  }
  0x18   : > { %s347_s12 = scalar_lea.vmem %s1328_s2, %s1228_s21  ;;  %s343_s26 = scalar_lea.vmem %s1327_s1, %s1228_s21 }
  0x19   : > { %v1240_v16 = vld [vmem:[%s347_s12] sm:$0xff]  ;;  %s339_s13 = scalar_lea.vmem %s1326_s0, %s1228_s21  ;;  %s351_s19 = scalar_lea.vmem %s1329_s3, %s1228_s21 }
  0x1a   : > { %946 = vmatmul.mubr.msk.f32.vlgmr.msra.gmra.mrb[0].mxu1 %vm369_vm1, %v1240_v16  ;;  %935 = vmatmul.mubr.msk.f32.vlgmr.msra.gmra.mrb[0].mxu0 %vm369_vm1, %v1240_v16  ;;  %v353_v22 = vld [vmem:[%s343_s26] sm:$0xff]  ;;  %s1105_s21 = smov 32   ;;  %s891_s22 = sshll.u32 %s333_s20, 3 }
  0x1b   : > { %961 = vmatprep.mubr.msk.f32.mxu1 %vm1102_vm0, %v1103_v9  ;;  %983 = vmatpush3.bf16.msra.mxu0 %v982_v17  ;;  %v352_v27 = vld [vmem:[%s339_s13] sm:$0xff]  ;;  %s335_s25 = scalar_lea.vmem [#allocation2], %s891_s22  ;;  %s1283_s13 = scalar_lea.hbm %s1334_s8, %s904_s24 }
  0x1c   : > { %956 = vmatprep.mubr.msk.f32.mxu0 %vm1102_vm0, %v1103_v9  ;;  %984 = vmatprep.subr.bf16.mxu0 %v1101_v3  ;;  %v366_v34 = vld [vmem:[%s351_s19] sm:$0xff]  ;;  %s792_s26 = sshll.u32 %s335_s25, 4  ;;  %s779_s17 = scalar_lea.sflag [#allocation3], %s333_s20  ;;  %s1285_s26 = int_to_ptr.vmem [resolvable:$true] %s792_s26 }
  0x1d   : > { %s1041_s18 = sshll.u32 %s1106_s9, 4  ;;  %s1042_s18 = int_to_ptr.vmem [resolvable:$false] %s1041_s18 }
  0x1e   : > { %s1043_s19 = scalar_lea.vmem %s1042_s18, 256  ;;  %p1044_p0 = scmp.lt.s32.totalorder %s1285_s26, %s1042_s18 }
  0x1f   : > { %986 = vmatpush3.bf16.msra.mxu0 %v985_v20 }
  0x22   : > { %957 = vmatmul.mubr.msk.f32.vlgmr.msra.gmra.mrb[2].mxu0 %vm369_vm1, %v1240_v16 }
  0x84   : > { %v744_v28 = vpop.permute.xlu0 %743 }
  0xed   : > { %v509_v23 = vpop.f32.mrb[0].mxu1  ;;  %v439_v25 = vpop.f32.mrb[0].mxu0 }
  0xee   : > { %v947_v24 = vpop.f32.mrb[1].mxu1  ;;  %960 = vmatpush3.msra.mxu1 %v509_v23  ;;  %v936_v26 = vpop.f32.mrb[1].mxu0 }
  0xef   : > { %962 = vmatmul.mubr.msk.f32.vlgmr.msra.gmra.mrb[2].mxu1 %vm583_vm2, %v353_v22  ;;  %964 = vmatprep.subr.mxu1 %v1103_v9 }
  0xf0   : > { %965 = vmatpush3.msra.mxu1 %v439_v25  ;;  %966 = vmatprep.mubr.msk.f32.mxu1 %vm1102_vm0, %v1103_v9 }
  0xf3   : > { %967 = vmatmul.mubr.msk.f32.vlgmr.msra.gmra.mrb[4].mxu1 %vm583_vm2, %v352_v27 }
  0xf5   : > { %v579_v29 = vpop.f32.mrb[2].mxu0 }
  0xf6   : > { %v746_v30 = vadd.f32 %v744_v28, %v579_v29  ;;  %v958_v31 = vpop.f32.mrb[3].mxu0 }
  0xf8   : > { %748 = vrot.lane.b32.xlu0 %v746_v30, %s1104_s23 }
 0x16a   : > { %v749_v43 = vpop.permute.xlu0 %748 }
 0x1c2   : > { %v653_v32 = vpop.f32.mrb[2].mxu1 }
 0x1c3   : > { %v963_v33 = vpop.f32.mrb[3].mxu1 }
 0x1c6   : > { %v726_v35 = vpop.f32.mrb[4].mxu1 }
 0x1c7   : > { %v727_v36 = vadd.f32 %v726_v35, %v653_v32  ;;  %v968_v37 = vpop.f32.mrb[5].mxu1 }
 0x1c9   : > { %v730_v38 = vadd.f32 %v727_v36, %v366_v34 }
 0x1cb   : > { %v731_v39 = vadd.f32 %v730_v38, %v579_v29 }
 0x1cd   : > { %v901_v40 = vmul.f32 -1.442695, %v731_v39 }
 0x1cf   : > { %1031 = vpow2.f32 %v901_v40 }
 0x1d9   : > { %v1032_v41 = vpop.eup %1031 }
 0x1da   : > { %v735_v42 = vadd.f32 1.0, %v1032_v41 }
 0x1dc   : > { %1033 = vrcp.f32 %v735_v42 }
 0x1e6   : > { %v1034_v44 = vpop.eup %1033 }
 0x1e7   : > { %v751_v45 = vmul.f32 %v1034_v44, %v749_v43 }
 0x1e9   : > { %753 = vrot.lane.b32.xlu1 %v751_v45, %s1104_s23 }
 0x25b   : > { %v754_v46 = vpop.permute.xlu1 %753 }
 0x25c   : > { %v756_v47 = vadd.f32 %v754_v46, %v730_v38 }
 0x25e   : > { %1035 = vtanh.f32 %v756_v47 }
 0x268   : > { %v1036_v48 = vpop.eup %1035 }
 0x269   : > { %759 = vrot.lane.b32.xlu1 %v1036_v48, %s1104_s23 }
 0x2db   : > { %v760_v49 = vpop.permute.xlu1 %759 }
 0x2dc   : > { %v762_v50 = vsub.f32 %v1240_v16, %v760_v49 }
 0x2de   : > { %764 = vrot.lane.b32.xlu0 %v762_v50, %s1105_s21 }
 0x350   : > { %v765_v51 = vpop.permute.xlu0 %764 }
 0x351   : > { %v767_v52 = vmul.f32 %v1034_v44, %v765_v51 }
 0x353   : > { %769 = vrot.lane.b32.xlu1 %v767_v52, %s1105_s21 }
 0x3c5   : > { %v770_v53 = vpop.permute.xlu1 %769 }
 0x3c6   : > { %v772_v54 = vadd.f32 %v1036_v48, %v770_v53 }
 0x3c8   : > { %774 = vrot.lane.b32.xlu0 %v772_v54, %s1104_s23  ;;  %s1037_s23 = scalar_lea.vmem %s1285_s26, 128 }
 0x3c9   : > { %p1038_p11 = scmp.ne.s32.totalorder %s1285_s26, %s1037_s23  ;;  %p1045_p1 = scmp.lt.s32.totalorder %s1043_s19, %s1037_s23 }
 0x3cb   : > { %p1039_p12 = pnand %p1038_p11, %p1190_p5  ;;  %p1046_p2 = por %p1045_p1, %p1044_p0 }
 0x3cd   : > { %p1040_p13 = pneg %p1039_p12 }
 0x3cf   : > { %p1047_p3 = pnand %p1046_p2, %p1040_p13 }
 0x43a   : > { %v775_v55 = vpop.permute.xlu0 %774 }
 0x43b   : > { %777 = vst.msk [vmem:[%s335_s25] sm:$0xff] %vm369_vm1, %v775_v55 }
 0x43c   : > { %1050 = shalt.err (!%p1047_p3)
}
 0x43d   : > { %s1051_s21 = scalar_lea.hbm %s1283_s13, 128  ;;  %s1055_s24 = scalar_lea.hbm %s1334_s8, 256 }
 0x43e   : > { %p1052_p4 = scmp.ne.s32.totalorder %s1283_s13, %s1051_s21  ;;  %p1056_p9 = scmp.lt.u32.totalorder %s1283_s13, %s1334_s8 }
 0x43f   : > { %p1057_p10 = scmp.lt.u32.totalorder %s1055_s24, %s1051_s21  ;;  %p1059_p12 = scmp.lt.u32.totalorder %s1051_s21, %s1283_s13 }
 0x440   : > { %p1053_p7 = pnand %p1052_p4, %p1190_p5 }
 0x441   : > { %p1058_p11 = por %p1057_p10, %p1056_p9 }
 0x442   : > { %p1054_p8 = pneg %p1053_p7 }
 0x443   : > { %p1060_p13 = por %p1059_p12, %p1058_p11 }
 0x445   : > { %p1061_p0 = pnand %p1060_p13, %p1054_p8 }
 0x447   : > { %1064 = shalt.err (!%p1061_p0)
}
 0x448   : > { %987 = dma.vmem_to_hbm [thread:$0]  (%p1190_p5), %s1285_s26, 128, %s1283_s13, %s779_s17  }
 0x449 PF: > { %p993_p1 = scmp.ge.s32.totalorder %s1099_s30, 2  ;;  %s804_s12 = sand.u32 1, %s1087_s27  }
 0x44a   : > { %s805_s23 = scalar_lea.sflag [#allocation3], %s804_s12 }
 0x44b   : > { %p990_p2 = pnand %p993_p1, %p1194_p6 }
 0x44d   : > { %1082 = dma.done.wait (!%p990_p2), %s805_s23, 128  }
 0x44e   : > { %1084 = vsyncadd (!%p990_p2), %s805_s23, 4294967168  ;;  %p18_p3 = scmp.ge.s32.totalorder %s1177_s11, 4   ;;  %s1337_s27 = smov %s1091_s28 }
 0x44f   : > { %s1338_s28 = smov %s1095_s29  ;;  %s1339_s29 = smov %s1188_s14 }
 0x450   : > { %s1340_s30 = smov %s1177_s11  ;;  %20 = sbr.rel (!%p18_p3) target bundleno = 3 (0x3), region = 96 }
 0x457   :  { %810 = vsyncpa [#allocation3], 1 }
 0x458   :  { %812 = vsyncpa [#allocation3 + $0x1], 1 }

</bundles_post_ra>
